<compile_context>
chip_gen: v7x
topology: tpu7x:2x2x1
jax: 0.10.0
libtpu: 0.0.40
codegen_flags: <defaults>
</compile_context>

<pallas_src>
import jax
import jax.numpy as jnp
from jax import lax
from jax.experimental import pallas as pl
from jax.experimental.pallas import tpu as pltpu
import numpy as np

EPS = 1e-5
KH = KW = 3
PAD = 1                       # ConvTranspose2d padding (module default)
ROW_TILE_TARGET = 512         # max matmul M (rows) per grid step
MIN_GRID_STEPS = 8            # >= 4 steps per TensorCore on v7x (2 TCs)


def _default_vmem_limit():
    # Generation-aware VMEM budget: v7x has 64 MiB physical (vs 128 on v5e/v6e).
    try:
        cap = int(pltpu.get_tpu_info().vmem_capacity_bytes)
    except Exception:
        cap = 128 * 1024 * 1024
    return int(min(64 * 1024 * 1024, (cap * 7) // 10))


VMEM_LIMIT_BYTES = _default_vmem_limit()


def _pick_row_tile(real_rows, wcin_p, wcout, vmem_budget):
    """Rows (matmul M) per grid step.

    Large problems: push M toward ROW_TILE_TARGET (amortize ~600-cycle step
    overhead, back-to-back MXU pushes).  Small problems: shrink so there are
    >= MIN_GRID_STEPS steps (software pipelining + v7x dual-TC sharding).
    Finally cap by the per-step VMEM footprint.
    """
    th = min(ROW_TILE_TARGET, max(8, -(-real_rows // MIN_GRID_STEPS)))

    def step_bytes(t):
        in_b = 2 * (t + KH - 1) * wcin_p * 2      # bf16 input tile, double-buffered
        w_b = 2 * KH * wcin_p * wcout * 2         # bf16 banded weight
        out_b = 2 * t * wcout * 2                 # bf16 conv tile, double-buffered
        st_b = 2 * 2 * wcout * 4 + 2 * t * 4      # stats + row mask
        acc_b = t * wcout * 4                     # f32 accumulator scratch
        return in_b + w_b + out_b + st_b + acc_b

    while th > 8 and step_bytes(th) > (vmem_budget * 3) // 5:
        th = max(8, th // 2)
    return th


def _make_conv_stats_kernel(th, wcin_p, wcout):
    """Single pass: 3x3 conv as 3 banded per-kh matmuls + per-tile BN partials."""

    def kernel(x_ref, w_ref, m_ref, conv_ref, stats_ref, acc_ref):
        # x_ref:     (1, th+KH-1, wcin_p) bf16  row tile + halo of the stacked slab
        # w_ref:     (KH, wcin_p, wcout)  bf16  banded per-kh weights (kw folded in)
        # m_ref:     (1, th, 1)           f32   1.0 for rows that are real output rows
        # conv_ref:  (1, th, wcout)       bf16  raw conv tile (pre-BN)
        # stats_ref: (1, 2, wcout)        f32   per-tile (sum, mean-centered sumsq)
        # acc_ref:   (th, wcout)          f32   VMEM accumulator (no vreg spills)
        acc_ref[...] = jnp.dot(x_ref[0, 0:th, :], w_ref[0],
                               preferred_element_type=jnp.float32)
        for kh in range(1, KH):
            acc_ref[...] += jnp.dot(x_ref[0, kh:kh + th, :], w_ref[kh],
                                    preferred_element_type=jnp.float32)
        acc = acc_ref[...]
        conv_ref[0] = acc.astype(conv_ref.dtype)

        # Per-tile BN partials with the tile mean removed (Chan-style combine in
        # the wrapper) -> avoids catastrophic cancellation of E[x^2] - E[x]^2.
        vf = m_ref[0]                                                 # (th, 1)
        xm = acc * vf
        s = jnp.sum(xm, axis=0, keepdims=True)                        # (1, wcout)
        cnt = jnp.maximum(jnp.sum(vf, axis=0, keepdims=True), 1.0)    # (1, 1)
        mu = s / cnt
        d = (acc - mu) * vf
        m2 = jnp.sum(d * d, axis=0, keepdims=True)                    # (1, wcout)
        stats_ref[0] = jnp.concatenate([s, m2], axis=0)               # one (2,wcout) store

    return kernel


@jax.jit
def decbr2d_forward(x_nchw, weight, bias, gamma, beta):
    """ConvTranspose2d(3,1,1,bias) + BatchNorm2d(train) + ReLU.  NCHW in/out.

    weight: (Cin, Cout, KH, KW) -- PyTorch ConvTranspose2d layout.  `bias` is
    accepted for API parity but folded away (exactly cancelled by the
    train-mode BatchNorm mean subtraction).
    """
    del bias  # cancelled by BN mean subtraction (see header comment)
    n, cin, h, w = x_nchw.shape
    cout = weight.shape[1]

    pe = KH - 1 - PAD                      # equivalent-conv padding (=1)
    h_out = h + KH - 1 - 2 * PAD           # = h for the default config
    w_out = w + KW - 1 - 2 * PAD           # = w
    hp_img = h_out + KH - 1                # padded rows per image in the slab
    wp = w_out + KW - 1
    wcin_p = wp * cin
    wcout = w_out * cout

    total_real_rows = n * hp_img - (KH - 1)     # conv-computable rows of the slab
    th = _pick_row_tile(total_real_rows, wcin_p, wcout, VMEM_LIMIT_BYTES)
    nt = -(-total_real_rows // th)
    r_out = nt * th
    r_in = r_out + KH - 1

    # ---------------- wrapper-side layout prep (bf16, ~1x input bytes) --------
    x_nhwc = jnp.transpose(x_nchw.astype(jnp.bfloat16), (0, 2, 3, 1))      # (n,h,w,cin)
    xp = jnp.pad(x_nhwc, ((0, 0), (pe, pe), (pe, pe), (0, 0)))             # (n,hp,wp,cin)
    slab = xp.reshape(n * hp_img, wcin_p)                                  # stacked images
    slab = jnp.pad(slab, ((0, r_in - n * hp_img), (0, 0)))                 # trailing zeros
    # Row tiles with a (KH-1)-row halo baked in (static gather; dup ~2/th).
    gidx = (np.arange(nt)[:, None] * th + np.arange(th + KH - 1)[None, :]).reshape(-1)
    xt = jnp.take(slab, jnp.asarray(gidx, dtype=jnp.int32), axis=0)
    xt = xt.reshape(nt, th + KH - 1, wcin_p)

    # Row-validity mask: inter-image junk rows + trailing padding excluded from BN.
    rows = np.arange(r_out)
    valid_np = ((rows % hp_img) < h_out) & (rows < total_real_rows)
    vmask = jnp.asarray(valid_np.astype(np.float32).reshape(nt, th, 1))
    cnt_t = np.maximum(valid_np.reshape(nt, th).sum(axis=1), 1).astype(np.float32)

    # ConvTranspose2d(stride=1) == conv with channel-transposed, flipped weight.
    w_conv = jnp.flip(jnp.transpose(weight, (1, 0, 2, 3)), axis=(2, 3))    # (cout,cin,KH,KW)
    # Fold the 3 kw taps into one banded (wp*cin, w_out*cout) weight per kh so the
    # kernel multiplies the full-lane-width row slice (no lane-misaligned slices).
    # TODO(synk): for large W*Cin*Cout the banded weight scales as W^2*Cin*Cout
    # (v7x has only 64 MiB VMEM) -- fall back to per-tap (th*W,Cin)@(Cin,Cout).
    wb = []
    for kh in range(KH):
        acc_k = jnp.zeros((wcin_p, wcout), jnp.float32)
        for kw in range(KW):
            shift = np.zeros((wp, w_out), np.float32)
            shift[np.arange(w_out) + kw, np.arange(w_out)] = 1.0
            acc_k = acc_k + jnp.kron(jnp.asarray(shift), w_conv[:, :, kh, kw].T)
        wb.append(acc_k)
    wb = jnp.stack(wb, axis=0).astype(jnp.bfloat16)                        # (KH,wcin_p,wcout)

    cparams = pltpu.CompilerParams(
        dimension_semantics=("parallel",),
        vmem_limit_bytes=VMEM_LIMIT_BYTES,
    )

    # ---------------- single Pallas pass: conv (bf16) + BN partials -----------
    conv_buf, stats = pl.pallas_call(
        _make_conv_stats_kernel(th, wcin_p, wcout),
        out_shape=(
            jax.ShapeDtypeStruct((nt, th, wcout), jnp.bfloat16),
            jax.ShapeDtypeStruct((nt, 2, wcout), jnp.float32),
        ),
        grid=(nt,),
        in_specs=[
            pl.BlockSpec((1, th + KH - 1, wcin_p), lambda t: (t, 0, 0)),
            # Constant index_map -> Mosaic keeps the weight resident.
            # (pipeline_mode=pl.Buffered(1) would drop its second buffer; the
            #  weight is tiny at these channel counts so it is left default.)
            pl.BlockSpec((KH, wcin_p, wcout), lambda t: (0, 0, 0)),
            pl.BlockSpec((1, th, 1), lambda t: (t, 0, 0)),
        ],
        out_specs=(
            pl.BlockSpec((1, th, wcout), lambda t: (t, 0, 0)),
            pl.BlockSpec((1, 2, wcout), lambda t: (t, 0, 0)),
        ),
        scratch_shapes=[pltpu.VMEM((th, wcout), jnp.float32)],
        compiler_params=cparams,
    )(xt, wb, vmask)

    # -------- tiny cross-tile reduction -> per-channel affine (Chan combine) --
    m_total = float(n * h_out * w_out)
    s_g = stats[:, 0, :].reshape(nt, w_out, cout)     # per-(tile, wi) sums
    m2_g = stats[:, 1, :].reshape(nt, w_out, cout)    # per-(tile, wi) centered sumsq
    mean_c = jnp.sum(s_g, axis=(0, 1)) / m_total
    cnt = jnp.asarray(cnt_t)[:, None, None]
    between = jnp.sum(s_g * s_g / cnt, axis=(0, 1)) - m_total * mean_c * mean_c
    var_c = jnp.maximum((jnp.sum(m2_g, axis=(0, 1)) + between) / m_total, 0.0)
    scale_c = gamma * lax.rsqrt(var_c + EPS)
    shift_c = beta - mean_c * scale_c

    # -------- fused XLA epilogue: extract rows, affine + ReLU + NCHW ----------
    conv_flat = conv_buf.reshape(nt * th, wcout)
    need = n * hp_img
    if conv_flat.shape[0] >= need:
        cf = conv_flat[:need]
    else:
        cf = jnp.pad(conv_flat, ((0, need - conv_flat.shape[0]), (0, 0)))
    conv_img = cf.reshape(n, hp_img, w_out, cout)[:, :h_out]     # drop junk rows
    y = jnp.maximum(conv_img.astype(jnp.float32) * scale_c + shift_c, 0.0)
    return jnp.transpose(y, (0, 3, 1, 2))


def reference(x_nchw, weight, bias, gamma, beta):
    """Exact f32 reference: ConvTranspose2d(3,1,1) + train-mode BN + ReLU."""
    pe = KH - 1 - PAD
    conv = lax.conv_general_dilated(
        x_nchw, jnp.flip(weight, axis=(2, 3)),
        window_strides=(1, 1), padding=((pe, pe), (pe, pe)),
        dimension_numbers=("NCHW", "IOHW", "NCHW"),
        precision=lax.Precision.HIGHEST,
    ) + bias[None, :, None, None]
    mean = jnp.mean(conv, axis=(0, 2, 3), keepdims=True)
    var = jnp.mean((conv - mean) ** 2, axis=(0, 2, 3), keepdims=True)
    y = (conv - mean) * lax.rsqrt(var + EPS)
    y = y * gamma[None, :, None, None] + beta[None, :, None, None]
    return jnp.maximum(y, 0.0)


if __name__ == "__main__":
    key = jax.random.PRNGKey(0)
    k_x, k_w, k_b = jax.random.split(key, 3)

    N, Cin, H, W = 2, 4, 16, 16
    Cout = 8

    x = jax.random.normal(k_x, (N, Cin, H, W), dtype=jnp.float32)

    # ConvTranspose2d weight layout: (in_channels, out_channels, KH, KW).
    bound = 1.0 / np.sqrt(Cin * KH * KW)
    weight = jax.random.uniform(k_w, (Cin, Cout, KH, KW),
                                minval=-bound, maxval=bound, dtype=jnp.float32)
    bias = jax.random.uniform(k_b, (Cout,),
                              minval=-bound, maxval=bound, dtype=jnp.float32)
    gamma = jnp.ones((Cout,), jnp.float32)   # BatchNorm2d default init
    beta = jnp.zeros((Cout,), jnp.float32)

    out = jax.block_until_ready(decbr2d_forward(x, weight, bias, gamma, beta))
    ref = jax.block_until_ready(reference(x, weight, bias, gamma, beta))

    # Tolerance reflects bf16 MXU inputs + bf16 conv intermediate; error after
    # BN normalization is well inside 3e-2.
    np.testing.assert_allclose(np.asarray(out), np.asarray(ref),
                               rtol=3e-2, atol=3e-2)
    print("KERNEL_OK")
</pallas_src>

<mosaic_0001>
module attributes {stable_mosaic.version = 11 : i64} {
  func.func @kernel(%arg0: i32, %arg1: memref<1x10x72xbf16, #tpu.memory_space<vmem>>, %arg2: memref<3x72x128xbf16, #tpu.memory_space<vmem>>, %arg3: memref<1x8x1xf32, #tpu.memory_space<vmem>>, %arg4: memref<1x8x128xbf16, #tpu.memory_space<vmem>>, %arg5: memref<1x2x128xf32, #tpu.memory_space<vmem>>, %arg6: memref<8x128xf32, #tpu.memory_space<vmem>>) attributes {dimension_semantics = [#tpu.dimension_semantics<parallel>], iteration_bounds = array<i64: 5>, scalar_prefetch = 0 : i64, scratch_operands = 1 : i64, tpu.core_type = #tpu.core_type<tc>, window_params = [{transform_indices = @transform_0, window_bounds = array<i64: 1, 10, 72>}, {pipeline_mode = #tpu.pipeline_mode<synchronous>, transform_indices = @transform_1, window_bounds = array<i64: 3, 72, 128>}, {transform_indices = @transform_2, window_bounds = array<i64: 1, 8, 1>}, {transform_indices = @transform_3, window_bounds = array<i64: 1, 8, 128>}, {transform_indices = @transform_4, window_bounds = array<i64: 1, 2, 128>}]} {
    %c0 = arith.constant 0 : index
    %c0_0 = arith.constant 0 : index
    %c0_1 = arith.constant 0 : index
    %0 = vector.load %arg1[%c0, %c0_0, %c0_1] : memref<1x10x72xbf16, #tpu.memory_space<vmem>>, vector<1x8x72xbf16>
    %1 = vector.shape_cast %0 : vector<1x8x72xbf16> to vector<8x72xbf16>
    %c0_2 = arith.constant 0 : index
    %c0_3 = arith.constant 0 : index
    %c0_4 = arith.constant 0 : index
    %2 = vector.load %arg2[%c0_2, %c0_3, %c0_4] : memref<3x72x128xbf16, #tpu.memory_space<vmem>>, vector<1x72x128xbf16>
    %3 = vector.shape_cast %2 : vector<1x72x128xbf16> to vector<72x128xbf16>
    %cst = arith.constant dense<0.000000e+00> : vector<8x128xf32>
    %4 = tpu.matmul %1, %3, %cst {dimension_numbers = #tpu.dot_dimension_numbers<[1], [0], [0], [1], [0, 0, 1, 1], [], []>} : vector<8x72xbf16>, vector<72x128xbf16>, vector<8x128xf32> -> vector<8x128xf32>
    %c0_5 = arith.constant 0 : index
    %c0_6 = arith.constant 0 : index
    %5 = vector.load %arg6[%c0_5, %c0_6] : memref<8x128xf32, #tpu.memory_space<vmem>>, vector<8x128xf32>
    tpu.vector_store %arg6[%c0_5, %c0_6], %4 {strides = array<i32>} : memref<8x128xf32, #tpu.memory_space<vmem>>, vector<8x128xf32>,
    %c0_7 = arith.constant 0 : index
    %c0_8 = arith.constant 0 : index
    %6 = vector.load %arg6[%c0_7, %c0_8] : memref<8x128xf32, #tpu.memory_space<vmem>>, vector<8x128xf32>
    %c0_9 = arith.constant 0 : index
    %c1 = arith.constant 1 : index
    %c0_10 = arith.constant 0 : index
    %7 = vector.load %arg1[%c0_9, %c1, %c0_10] : memref<1x10x72xbf16, #tpu.memory_space<vmem>>, vector<1x8x72xbf16>
    %8 = vector.shape_cast %7 : vector<1x8x72xbf16> to vector<8x72xbf16>
    %c1_11 = arith.constant 1 : index
    %c0_12 = arith.constant 0 : index
    %c0_13 = arith.constant 0 : index
    %9 = vector.load %arg2[%c1_11, %c0_12, %c0_13] : memref<3x72x128xbf16, #tpu.memory_space<vmem>>, vector<1x72x128xbf16>
    %10 = vector.shape_cast %9 : vector<1x72x128xbf16> to vector<72x128xbf16>
    %cst_14 = arith.constant dense<0.000000e+00> : vector<8x128xf32>
    %11 = tpu.matmul %8, %10, %cst_14 {dimension_numbers = #tpu.dot_dimension_numbers<[1], [0], [0], [1], [0, 0, 1, 1], [], []>} : vector<8x72xbf16>, vector<72x128xbf16>, vector<8x128xf32> -> vector<8x128xf32>
    %12 = arith.addf %6, %11 : vector<8x128xf32>
    %c0_15 = arith.constant 0 : index
    %c0_16 = arith.constant 0 : index
    %13 = vector.load %arg6[%c0_15, %c0_16] : memref<8x128xf32, #tpu.memory_space<vmem>>, vector<8x128xf32>
    tpu.vector_store %arg6[%c0_15, %c0_16], %12 {strides = array<i32>} : memref<8x128xf32, #tpu.memory_space<vmem>>, vector<8x128xf32>,
    %c0_17 = arith.constant 0 : index
    %c0_18 = arith.constant 0 : index
    %14 = vector.load %arg6[%c0_17, %c0_18] : memref<8x128xf32, #tpu.memory_space<vmem>>, vector<8x128xf32>
    %c0_19 = arith.constant 0 : index
    %c2 = arith.constant 2 : index
    %c0_20 = arith.constant 0 : index
    %15 = vector.load %arg1[%c0_19, %c2, %c0_20] : memref<1x10x72xbf16, #tpu.memory_space<vmem>>, vector<1x8x72xbf16>
    %16 = vector.shape_cast %15 : vector<1x8x72xbf16> to vector<8x72xbf16>
    %c2_21 = arith.constant 2 : index
    %c0_22 = arith.constant 0 : index
    %c0_23 = arith.constant 0 : index
    %17 = vector.load %arg2[%c2_21, %c0_22, %c0_23] : memref<3x72x128xbf16, #tpu.memory_space<vmem>>, vector<1x72x128xbf16>
    %18 = vector.shape_cast %17 : vector<1x72x128xbf16> to vector<72x128xbf16>
    %cst_24 = arith.constant dense<0.000000e+00> : vector<8x128xf32>
    %19 = tpu.matmul %16, %18, %cst_24 {dimension_numbers = #tpu.dot_dimension_numbers<[1], [0], [0], [1], [0, 0, 1, 1], [], []>} : vector<8x72xbf16>, vector<72x128xbf16>, vector<8x128xf32> -> vector<8x128xf32>
    %20 = arith.addf %14, %19 : vector<8x128xf32>
    %c0_25 = arith.constant 0 : index
    %c0_26 = arith.constant 0 : index
    %21 = vector.load %arg6[%c0_25, %c0_26] : memref<8x128xf32, #tpu.memory_space<vmem>>, vector<8x128xf32>
    tpu.vector_store %arg6[%c0_25, %c0_26], %20 {strides = array<i32>} : memref<8x128xf32, #tpu.memory_space<vmem>>, vector<8x128xf32>,
    %c0_27 = arith.constant 0 : index
    %c0_28 = arith.constant 0 : index
    %22 = vector.load %arg6[%c0_27, %c0_28] : memref<8x128xf32, #tpu.memory_space<vmem>>, vector<8x128xf32>
    %23 = arith.truncf %22 : vector<8x128xf32> to vector<8x128xbf16>
    %c0_29 = arith.constant 0 : index
    %c0_30 = arith.constant 0 : index
    %c0_31 = arith.constant 0 : index
    %24 = vector.load %arg4[%c0_29, %c0_30, %c0_31] : memref<1x8x128xbf16, #tpu.memory_space<vmem>>, vector<1x8x128xbf16>
    %25 = vector.shape_cast %24 : vector<1x8x128xbf16> to vector<8x128xbf16>
    %26 = vector.shape_cast %23 : vector<8x128xbf16> to vector<1x8x128xbf16>
    tpu.vector_store %arg4[%c0_29, %c0_30, %c0_31], %26 {strides = array<i32>} : memref<1x8x128xbf16, #tpu.memory_space<vmem>>, vector<1x8x128xbf16>,
    %c0_32 = arith.constant 0 : index
    %c0_33 = arith.constant 0 : index
    %c0_34 = arith.constant 0 : index
    %27 = vector.load %arg3[%c0_32, %c0_33, %c0_34] : memref<1x8x1xf32, #tpu.memory_space<vmem>>, vector<1x8x1xf32>
    %28 = vector.shape_cast %27 : vector<1x8x1xf32> to vector<8x1xf32>
    %29 = vector.broadcast %28 : vector<8x1xf32> to vector<8x128xf32>
    %30 = arith.mulf %22, %29 : vector<8x128xf32>
    %cst_35 = arith.constant dense<0.000000e+00> : vector<128xf32>
    %31 = vector.multi_reduction <add>, %30, %cst_35 [0] : vector<8x128xf32> to vector<128xf32>
    %32 = vector.shape_cast %31 : vector<128xf32> to vector<1x128xf32>
    %cst_36 = arith.constant dense<0.000000e+00> : vector<1xf32>
    %33 = vector.multi_reduction <add>, %28, %cst_36 [0] : vector<8x1xf32> to vector<1xf32>
    %34 = vector.shape_cast %33 : vector<1xf32> to vector<1x1xf32>
    %cst_37 = arith.constant 1.000000e+00 : f32
    %35 = vector.broadcast %cst_37 : f32 to vector<1x1xf32>
    %36 = arith.maximumf %34, %35 : vector<1x1xf32>
    %37 = vector.broadcast %36 : vector<1x1xf32> to vector<1x128xf32>
    %38 = arith.divf %32, %37 : vector<1x128xf32>
    %39 = vector.broadcast %38 : vector<1x128xf32> to vector<8x128xf32>
    %40 = arith.subf %22, %39 : vector<8x128xf32>
    %41 = vector.broadcast %28 : vector<8x1xf32> to vector<8x128xf32>
    %42 = arith.mulf %40, %41 : vector<8x128xf32>
    %43 = arith.mulf %42, %42 : vector<8x128xf32>
    %cst_38 = arith.constant dense<0.000000e+00> : vector<128xf32>
    %44 = vector.multi_reduction <add>, %43, %cst_38 [0] : vector<8x128xf32> to vector<128xf32>
    %45 = vector.shape_cast %44 : vector<128xf32> to vector<1x128xf32>
    %46 = tpu.concatenate %32, %45 in 0 : vector<1x128xf32>, vector<1x128xf32> -> vector<2x128xf32>
    %c0_39 = arith.constant 0 : index
    %c0_40 = arith.constant 0 : index
    %c0_41 = arith.constant 0 : index
    %47 = vector.load %arg5[%c0_39, %c0_40, %c0_41] : memref<1x2x128xf32, #tpu.memory_space<vmem>>, vector<1x2x128xf32>
    %48 = vector.shape_cast %47 : vector<1x2x128xf32> to vector<2x128xf32>
    %49 = vector.shape_cast %46 : vector<2x128xf32> to vector<1x2x128xf32>
    tpu.vector_store %arg5[%c0_39, %c0_40, %c0_41], %49 {strides = array<i32>} : memref<1x2x128xf32, #tpu.memory_space<vmem>>, vector<1x2x128xf32>,
    return
  }
  func.func @transform_0(%arg0: i32) -> (i32, i32, i32) {
    %c0_i32 = arith.constant 0 : i32
    %c0_i32_0 = arith.constant 0 : i32
    %c0_i32_1 = arith.constant 0 : i32
    return %arg0, %c0_i32, %c0_i32_0 : i32, i32, i32
  }
  func.func @transform_1(%arg0: i32) -> (i32, i32, i32) {
    %c0_i32 = arith.constant 0 : i32
    %c0_i32_0 = arith.constant 0 : i32
    %c0_i32_1 = arith.constant 0 : i32
    %c0_i32_2 = arith.constant 0 : i32
    return %c0_i32, %c0_i32_0, %c0_i32_1 : i32, i32, i32
  }
  func.func @transform_2(%arg0: i32) -> (i32, i32, i32) {
    %c0_i32 = arith.constant 0 : i32
    %c0_i32_0 = arith.constant 0 : i32
    %c0_i32_1 = arith.constant 0 : i32
    return %arg0, %c0_i32, %c0_i32_0 : i32, i32, i32
  }
  func.func @transform_3(%arg0: i32) -> (i32, i32, i32) {
    %c0_i32 = arith.constant 0 : i32
    %c0_i32_0 = arith.constant 0 : i32
    %c0_i32_1 = arith.constant 0 : i32
    return %arg0, %c0_i32, %c0_i32_0 : i32, i32, i32
  }
  func.func @transform_4(%arg0: i32) -> (i32, i32, i32) {
    %c0_i32 = arith.constant 0 : i32
    %c0_i32_0 = arith.constant 0 : i32
    %c0_i32_1 = arith.constant 0 : i32
    return %arg0, %c0_i32, %c0_i32_0 : i32, i32, i32
  }
}

</mosaic_0001>

<bundles_post_ra>
// kernel: decbr2d_forward.1
= control target key start
LH: loop header
LB: loop body
LE: loop exit
PB: predicated region body
PF: predicated region fallthrough
CT: control target
= control target key end

     0   :  { %10 = vsyncpa [#allocation4], 0  ;;  %s1513_s0 = inlined_call_operand.hbm [shape: bf16[5,10,72], index: 0, kind: input, shape index: {}]   ;;  %s1514_s1 = inlined_call_operand.hbm [shape: bf16[3,72,128], index: 1, kind: input, shape index: {}]   ;;  %s1515_s2 = inlined_call_operand.hbm [shape: f32[5,8,1], index: 2, kind: input, shape index: {}]   ;;  %s1516_s3 = inlined_call_operand.hbm [shape: bf16[5,8,128], index: 3, kind: output, shape index: {0}]   ;;  %s1517_s4 = inlined_call_operand.hbm [shape: f32[5,2,128], index: 4, kind: output, shape index: {1}]  }
   0x1   :  { %12 = vsyncpa [#allocation4 + $0x1], 0 }
   0x2   :  { %13 = vsyncpa [#allocation7], 0 }
   0x3   :  { %14 = vsyncpa [#allocation5], 0 }
   0x4   :  { %16 = vsyncpa [#allocation5 + $0x1], 0 }
   0x5   :  { %17 = vsyncpa [#allocation11], 0 }
   0x6   :  { %19 = vsyncpa [#allocation11 + $0x1], 0  ;;  %s1195_s15 = smov 0   ;;  %s1197_s16 = smov 0  }
   0x7   :  { %s1199_s17 = smov 0   ;;  %s1201_s18 = smov 0  }
   0x8 LB: > { %s1216_s19 = sadd.s32 1, %s1158_s18   ;;  %s32_s20 = sadd.s32 1, %s1154_s17  ;;  %s1158_s18 = sphi %s1201_s18, %s1539_s18   ;;  %s1154_s17 = sphi %s1199_s17, %s1538_s17   ;;  %s1150_s16 = sphi %s1197_s16, %s1537_s16   ;;  %s1146_s15 = sphi %s1195_s15, %s1536_s15  }
   0x9   : > { %s29_s21 = ssub.s32 %s1158_s18, %s1216_s19  ;;  %p39_p0 = scmp.ne.s32.totalorder %s1154_s17, %s1150_s16 }
   0xa   : > { %p30_p1 = scmp.eq.s32.totalorder %s29_s21, 0  ;;  %p40_p2 = scmp.eq.s32.totalorder %s1158_s18, 0 }
   0xb   : > { %p903_p4 = scmp.lt.s32.totalorder %s1158_s18, 5  ;;  %s181_s23 = sand.u32 1, %s1158_s18  }
   0xc   : > { %s1225_s22 = scalar_select %p30_p1, %s1154_s17, %s32_s20  }
   0xd   : > { %p41_p3 = por %p40_p2, %p39_p0  ;;  %s183_s24 = sand.u32 1, %s1154_s17  }
   0xe   : > { %s1233_s25 = sshll.u32 %s183_s24, 3  ;;  %s806_s26 = sshll.u32 %s1158_s18, 7 }
   0xf   : > { %s1241_s29 = scalar_lea.hbm %s1513_s0, %s806_s26  ;;  %s185_s30 = scalar_lea.vmem [#allocation3], %s1233_s25 }
  0x10   : > { %s192_s5 = sshll.u32 %s185_s30, 4  ;;  %p1244_p5 = pnand %p903_p4, %p41_p3  ;;  %s1248_s5 = int_to_ptr.vmem [resolvable:$true] %s192_s5 }
  0x11   : > { %s1250_s7 = scalar_lea.sflag [#allocation4], %s181_s23  ;;  %s964_s8 = scalar_lea.hbm %s1241_s29, 128 }
  0x12   : > { %p965_p6 = scmp.ne.s32.totalorder %s1241_s29, %s964_s8  ;;  %p966_p7 = pneg %p1244_p5 }
  0x13   : > { %s969_s11 = scalar_lea.hbm %s1513_s0, 640  ;;  %p970_p10 = scmp.lt.u32.totalorder %s1241_s29, %s1513_s0 }
  0x14   : > { %p967_p8 = pnand %p966_p7, %p965_p6  ;;  %p971_p11 = scmp.lt.u32.totalorder %s969_s11, %s964_s8 }
  0x15   : > { %p973_p13 = scmp.lt.u32.totalorder %s964_s8, %s1241_s29 }
  0x16   : > { %p968_p9 = pneg %p967_p8  ;;  %p972_p12 = por %p971_p11, %p970_p10 }
  0x18   : > { %p974_p1 = por %p973_p13, %p972_p12 }
  0x1a   : > { %p975_p2 = pnand %p974_p1, %p968_p9 }
  0x1c   : > { %978 = shalt.err (!%p975_p2)
}
  0x1d   : > { %s979_s14 = scalar_lea.vmem %s1248_s5, 128  ;;  %s1160_s20 = smov [#allocation3]  }
  0x1e   : > { %p980_p3 = scmp.ne.s32.totalorder %s1248_s5, %s979_s14  ;;  %s984_s21 = sshll.u32 %s1160_s20, 4  ;;  %s985_s21 = int_to_ptr.vmem [resolvable:$false] %s984_s21 }
  0x1f   : > { %s986_s23 = scalar_lea.vmem %s985_s21, 256  ;;  %p987_p8 = scmp.lt.s32.totalorder %s1248_s5, %s985_s21 }
  0x20   : > { %p982_p4 = pnand %p980_p3, %p966_p7  ;;  %p988_p10 = scmp.lt.s32.totalorder %s986_s23, %s979_s14 }
  0x22   : > { %p983_p6 = pneg %p982_p4  ;;  %p989_p11 = por %p988_p10, %p987_p8 }
  0x24   : > { %p990_p12 = pnand %p989_p11, %p983_p6 }
  0x26   : > { %993 = shalt.err (!%p990_p12)
}
  0x27   : > { %s1522_s24 = smov 64   ;;  %s1162_s27 = smov 4  }
  0x28   : > { %891 = dma.hbm_to_vmem [thread:$0]  (!%p1244_p5), %s1241_s29, 128, %s1248_s5, %s1250_s7, %s1522_s24, %s1522_s24, %s1162_s27  }
  0x29   : > { %s1282_s28 = sadd.s32 4294967295, %s1158_s18   ;;  %s765_s30 = sadd.s32 4294967294, %s1158_s18  }
  0x2a   : > { %p45_p9 = scmp.ne.s32.totalorder %s1150_s16, %s1146_s15  ;;  %p1518_p13 = scmp.eq.s32.totalorder %s1282_s28, 0 }
  0x2b   : > { %p116_p1 = scmp.eq.s32.totalorder %s1282_s28, 4  ;;  %p122_p2 = scmp.eq.s32.totalorder %s765_s30, 4 }
  0x2c   : > { %p1291_p3 = por %p1518_p13, %p45_p9  ;;  %p766_p4 = scmp.ge.s32.totalorder %s1158_s18, 1 }
  0x2d   : > { %p1299_p6 = por %p116_p1, %p39_p0  ;;  %p1303_p8 = por %p122_p2, %p45_p9 }
  0x2e   : > { %s1524_s8 = scalar_select %p1291_p3, 1, 0 }
  0x2f   : > { %s1525_s29 = scalar_select %p1299_p6, 1, 0 }
  0x30   : > { %s1526_s5 = scalar_select %p1303_p8, 1, 0 }
  0x31   : > { %p155_p10 = scmp.lt.s32.totalorder %s1158_s18, 6  ;;  %s1163_s10 = smov [#allocation6]  }
  0x32   : > { %s167_s11 = sshll.u32 %s1163_s10, 4  ;;  %s1317_s14 = scalar_lea.hbm %s1515_s2, %s806_s26  ;;  %s1324_s11 = int_to_ptr.vmem [resolvable:$true] %s167_s11 }
  0x33   : > { %p1308_p11 = pnand %p766_p4, %p155_p10  ;;  %s206_s20 = scalar_lea.vmem [#allocation8], %s1233_s25 }
  0x34   : > { %s213_s21 = sshll.u32 %s206_s20, 4  ;;  %s994_s30 = scalar_lea.hbm %s1317_s14, 128  ;;  %s1322_s21 = int_to_ptr.vmem [resolvable:$true] %s213_s21 }
  0x35   : > { %s1527_s9 = scalar_select %p1308_p11, 1, 0 }
  0x36   : > { %p884_p0 = pneg %p1308_p11  ;;  %p995_p9 = scmp.ne.s32.totalorder %s1317_s14, %s994_s30 }
  0x37   : > { %s999_s25 = scalar_lea.hbm %s1515_s2, 640  ;;  %p1000_p4 = scmp.lt.u32.totalorder %s1317_s14, %s1515_s2 }
  0x38   : > { %p1328_p12 = pnand %p884_p0, %p1518_p13  ;;  %p997_p1 = pnand %p995_p9, %p966_p7 }
  0x39   : > { %p1001_p10 = scmp.lt.u32.totalorder %s999_s25, %s994_s30  ;;  %p1003_p0 = scmp.lt.u32.totalorder %s994_s30, %s1317_s14 }
  0x3a   : > { %p998_p2 = pneg %p997_p1 }
  0x3b   : > { %p1002_p8 = por %p1001_p10, %p1000_p4 }
  0x3d   : > { %p1004_p13 = por %p1003_p0, %p1002_p8 }
  0x3f   : > { %p1005_p6 = pnand %p1004_p13, %p998_p2 }
  0x41   : > { %1008 = shalt.err (!%p1005_p6)
}
  0x42   : > { %s1009_s20 = scalar_lea.vmem %s1322_s21, 128  ;;  %s1164_s26 = smov [#allocation8]  }
  0x43   : > { %p1010_p9 = scmp.ne.s32.totalorder %s1322_s21, %s1009_s20  ;;  %s1014_s10 = sshll.u32 %s1164_s26, 4  ;;  %s1015_s10 = int_to_ptr.vmem [resolvable:$false] %s1014_s10 }
  0x44   : > { %s1016_s12 = scalar_lea.vmem %s1015_s10, 256  ;;  %p1017_p11 = scmp.lt.s32.totalorder %s1322_s21, %s1015_s10 }
  0x45   : > { %p1012_p1 = pnand %p1010_p9, %p966_p7  ;;  %p1018_p4 = scmp.lt.s32.totalorder %s1016_s12, %s1009_s20 }
  0x47   : > { %p1013_p3 = pneg %p1012_p1  ;;  %p1019_p10 = por %p1018_p4, %p1017_p11 }
  0x49   : > { %p1020_p8 = pnand %p1019_p10, %p1013_p3 }
  0x4b   : > { %1023 = shalt.err (!%p1020_p8)
}
  0x4c   : > { %894 = dma.hbm_to_vmem [thread:$0]  (!%p1244_p5), %s1317_s14, 128, %s1322_s21, %s1250_s7  }
  0x4d   : > { %s1024_s13 = scalar_lea.hbm %s1514_s1, 1728  ;;  %p1026_p13 = pneg %p1328_p12 }
  0x4e   : > { %p1025_p7 = scmp.ne.s32.totalorder %s1514_s1, %s1024_s13  ;;  %p1031_p11 = scmp.lt.u32.totalorder %s1024_s13, %s1514_s1 }
  0x50   : > { %p1027_p6 = pnand %p1026_p13, %p1025_p7 }
  0x52   : > { %p1028_p3 = pneg %p1027_p6 }
  0x54   : > { %p1033_p2 = pnand %p1031_p11, %p1028_p3 }
  0x56   : > { %1036 = shalt.err (!%p1033_p2)
}
  0x57   : > { %s1037_s6 = scalar_lea.vmem %s1324_s11, 1728  ;;  %p1045_p1 = scmp.lt.s32.totalorder %s1324_s11, %s1324_s11 }
  0x58   : > { %p1038_p5 = scmp.ne.s32.totalorder %s1324_s11, %s1037_s6  ;;  %p1046_p4 = scmp.lt.s32.totalorder %s1037_s6, %s1037_s6 }
  0x5a   : > { %p1040_p0 = pnand %p1038_p5, %p1026_p13  ;;  %p1047_p10 = por %p1046_p4, %p1045_p1 }
  0x5c   : > { %p1041_p9 = pneg %p1040_p0 }
  0x5e   : > { %p1048_p8 = pnand %p1047_p10, %p1041_p9 }
  0x60   : > { %1051 = shalt.err (!%p1048_p8)
}
  0x61   : > { %s1529_s7 = smov 64   ;;  %p1530_p7 = scmp.ne.s32.totalorder %s1527_s9, 0 }
  0x62   : > { %887 = dma.hbm_to_vmem [thread:$0]  (!%p1328_p12), %s1514_s1, 1728, %s1324_s11, [#allocation7], %s1529_s7, %s1529_s7, %s1162_s27  }
  0x63   : > { %222 = sbr.rel (%p1530_p7) target bundleno = 429 (0x1ad), region = 32  ;;  %s224_s21 = sand.u32 (!%p1530_p7), 1, %s1282_s28  }
  0x64   : > { %s1384_s12 = sand.u32 (!%p1530_p7), 1, %s1150_s16   ;;  %s225_s23 = scalar_lea.sflag (!%p1530_p7), [#allocation4], %s224_s21 }
  0x65   : > { %s775_s30 = sshll.u32 (!%p1530_p7), %s1384_s12, 3  ;;  %p1531_p13 = scmp.ne.s32.totalorder (!%p1530_p7), %s1524_s8, 0 }
  0x66   : > { %s1387_s25 = scalar_lea.vmem (!%p1530_p7), [#allocation3], %s775_s30 }
  0x6a   : > { %1125 = dma.done.wait (%p1531_p13), %s225_s23, 128  }
  0x6b   : > { %1127 = vsyncadd (%p1531_p13), %s225_s23, 4294967168  ;;  %p1532_p12 = scmp.eq.s32.totalorder %s1282_s28, 0 }
  0x6d   : > { %1129 = dma.done.wait (%p1532_p12), [#allocation7], 1728   ;;  %p1533_p6 = pmov %p1532_p12 }
  0x6e   : > { %s1397_s27 = scalar_lea.vmem [#allocation8], %s775_s30 }
  0x6f   : > { %1131 = vsyncadd (%p1533_p6), [#allocation7], 4294965568 }
  0x70   : > { %1133 = dma.done.wait (%p1531_p13), %s225_s23, 128  }
  0x71   : > { %1135 = vsyncadd (%p1531_p13), %s225_s23, 4294967168  ;;  %v1165_v0 = vmov 0.0   ;;  %vm1166_vm0 = vmmov 0   ;;  %v1167_v1 = vmov 0   ;;  %v945_v2 = vld [vmem:[#allocation6 + $0x24] sm:$0xff]   ;;  %v946_v3 = vld [vmem:[#allocation6 + $0x2c] sm:$0xff]  }
  0x72   : > { %839 = vmatprep.subr.bf16.mxu0 %v1165_v0  ;;  %825 = vmatprep.subr.bf16.mxu1 %v1165_v0  ;;  %v950_v4 = vld [vmem:[#allocation6] sm:$0xff]   ;;  %v947_v5 = vld [vmem:[#allocation6 + $0x34] sm:$0xff]   ;;  %v953_v9 = vld [vmem:[#allocation6 + $0x8] sm:$0xff]   ;;  %vm318_vm1 = vcmask 1043456   ;;  %vm573_vm2 = vcmask 7168   ;;  %vm314_vm3 = vcmask 588800  }
  0x73   : > { %849 = vmatprep.mubr.msk.bf16.mxu0 %vm1166_vm0, %v1165_v0  ;;  %835 = vmatprep.mubr.msk.bf16.mxu1 %vm1166_vm0, %v1165_v0  ;;  %v951_v6 = vld [vmem:[%s1387_s25] sm:$0x1f]   ;;  %v949_v10 = vld [vmem:[#allocation6 + $0x44] ss:$0 sps:$4 sm:$0xff]   ;;  %v959_v16 = vld [vmem:[#allocation6 + $0x20] ss:$0 sps:$4 sm:$0xff]  }
  0x74   : > { %944 = vset.pattern.permute.xlu0 %v1167_v1  ;;  %840 = vmatpush3.bf16.msra.mxu0 %v945_v2  ;;  %v948_v7 = vld [vmem:[#allocation6 + $0x3c] sm:$0xff]   ;;  %v384_v8 = vshll.u32 %v951_v6, 16  ;;  %v955_v11 = vld [vmem:[#allocation6 + $0x10] sm:$0xff]   ;;  %v382_v12 = vshrl.u32 %v951_v6, 16  ;;  %v419_v14 = vsel %vm318_vm1, %v949_v10, 0  ;;  %v952_v20 = vld [vmem:[#allocation6 + $0x48] sm:$0xff]  }
  0x75   : > { %841 = vmatprep.subr.bf16.mxu0 %v1165_v0  ;;  %826 = vmatpush3.bf16.msra.mxu1 %v950_v4  ;;  %v957_v15 = vld [vmem:[#allocation6 + $0x18] sm:$0xff]   ;;  %v320_v22 = vsel %vm318_vm1, %v959_v16, 0  ;;  %v954_v24 = vld [vmem:[#allocation6 + $0x50] sm:$0xff]   ;;  %v958_v31 = vld [vmem:[#allocation6 + $0x60] sm:$0xff]   ;;  %s778_s8 = sshll.u32 %s1384_s12, 2  ;;  %s802_s9 = sshll.u32 %s1282_s28, 6 }
  0x76   : > { %827 = vmatprep.subr.bf16.mxu1 %v1165_v0  ;;  %v386_v13 = vrot.slane %v384_v8, 1  ;;  %v560_v17 = vld [vmem:[%s1397_s27] sm:$0xff]  ;;  %v960_v33 = vld [vmem:[#allocation6 + $0x68] ss:$0 sps:$4 sm:$0xff]   ;;  %s268_s11 = scalar_lea.vmem [#allocation9], %s778_s8  ;;  %s1439_s10 = scalar_lea.hbm %s1516_s3, %s802_s9 }
  0x77   : > { %563 = vperm.xlu0 %944, %v560_v17   ;;  %v574_v19 = vsel %vm573_vm2, %v560_v17, 0.0  ;;  %v277_v26 = vld [vmem:[%s1387_s25] sm:$0xf]  ;;  %v513_v35 = vsel %vm318_vm1, %v960_v33, 0  ;;  %s620_s13 = sshll.u32 %s268_s11, 4  ;;  %s602_s6 = scalar_lea.sflag [#allocation5], %s1384_s12  ;;  %s1441_s13 = int_to_ptr.vmem [resolvable:$true] %s620_s13 }
  0x78   : > { %842 = vmatpush3.bf16.msra.mxu0 %v946_v3  ;;  %v387_v18 = vor.u32 %v386_v13, %v382_v12  ;;  %v575_v21 = vrot.slane %v574_v19, 4  ;;  %v956_v28 = vld [vmem:[#allocation6 + $0x58] sm:$0xff]   ;;  %s1052_s7 = scalar_lea.vmem %s1441_s13, 64  ;;  %p1534_p11 = scmp.ne.s32.totalorder %s1525_s29, 0 }
  0x79   : > { %843 = vmatprep.subr.bf16.mxu0 %v1165_v0  ;;  %828 = vmatpush3.bf16.msra.mxu1 %v953_v9  ;;  %v961_v34 = vld [vmem:[%s1387_s25] sm:$0x1e]   ;;  %p1053_p3 = scmp.ne.s32.totalorder %s1441_s13, %s1052_s7  ;;  %s1168_s24 = smov [#allocation9]  }
  0x7a   : > { %829 = vmatprep.subr.bf16.mxu1 %v1165_v0  ;;  %v576_v23 = vadd.f32 %v575_v21, %v574_v19  ;;  %v481_v36 = vrot.slane %v961_v34, 1  ;;  %s1056_s14 = sshll.u32 %s1168_s24, 4  ;;  %s1057_s14 = int_to_ptr.vmem [resolvable:$false] %s1056_s14 }
  0x7b   : > { %p1054_p2 = pnand %p1053_p3, %p1534_p11  ;;  %s1058_s21 = scalar_lea.vmem %s1057_s14, 128 }
  0x7c   : > { %844 = vmatpush3.bf16.msra.mxu0 %v947_v5  ;;  %v577_v25 = vrot.slane %v576_v23, 2  ;;  %p1059_p0 = scmp.lt.s32.totalorder %s1441_s13, %s1057_s14  ;;  %p1060_p9 = scmp.lt.s32.totalorder %s1058_s21, %s1052_s7 }
  0x7d   : > { %845 = vmatprep.subr.bf16.mxu0 %v1165_v0  ;;  %830 = vmatpush3.bf16.msra.mxu1 %v955_v11  ;;  %p1055_p5 = pneg %p1054_p2 }
  0x7e   : > { %831 = vmatprep.subr.bf16.mxu1 %v1165_v0  ;;  %v578_v27 = vadd.f32 %v577_v25, %v576_v23  ;;  %p1061_p1 = por %p1060_p9, %p1059_p0 }
  0x80   : > { %846 = vmatpush3.bf16.msra.mxu0 %v948_v7  ;;  %v579_v29 = vrot.slane %v578_v27, 1  ;;  %p1062_p4 = pnand %p1061_p1, %p1055_p5 }
  0x81   : > { %847 = vmatprep.subr.bf16.mxu0 %v1165_v0  ;;  %832 = vmatpush3.bf16.msra.mxu1 %v957_v15 }
  0x82   : > { %833 = vmatprep.subr.bf16.mxu1 %v1165_v0  ;;  %v580_v30 = vadd.f32 %v579_v29, %v578_v27 }
  0x84   : > { %848 = vmatpush3.bf16.msra.mxu0 %v419_v14  ;;  %v581_v32 = vmax.f32 %v580_v30, 1.0 }
  0x85   : > { %853 = vmatprep.subr.bf16.mxu0 %v1165_v0  ;;  %834 = vmatpush3.bf16.msra.mxu1 %v320_v22 }
  0x86   : > { %584 = vperm.xlu0 %944, %v581_v32  }
  0x87   : > { %850 = vmatmul.mubr.msk.bf16.vlgmr.msra.gmra.mrb[0].mxu0 %vm314_vm3, %v387_v18 }
  0x88   : > { %854 = vmatpush3.bf16.msra.mxu0 %v952_v20  ;;  %863 = vmatprep.mubr.msk.bf16.mxu0 %vm1166_vm0, %v1165_v0 }
  0x89   : > { %855 = vmatprep.subr.bf16.mxu0 %v1165_v0  ;;  %836 = vmatmul.mubr.msk.bf16.vlgmr.msra.gmra.mrb[0].mxu1 %vm314_vm3, %v277_v26 }
  0x8c   : > { %856 = vmatpush3.bf16.msra.mxu0 %v954_v24 }
  0x8d   : > { %857 = vmatprep.subr.bf16.mxu0 %v1165_v0 }
  0x90   : > { %858 = vmatpush3.bf16.msra.mxu0 %v956_v28 }
  0x91   : > { %859 = vmatprep.subr.bf16.mxu0 %v1165_v0 }
  0x94   : > { %860 = vmatpush3.bf16.msra.mxu0 %v958_v31 }
  0x95   : > { %861 = vmatprep.subr.bf16.mxu0 %v1165_v0 }
  0x98   : > { %862 = vmatpush3.bf16.msra.mxu0 %v513_v35 }
  0x9b   : > { %864 = vmatmul.mubr.msk.bf16.vlgmr.msra.gmra.mrb[0].mxu0 %vm314_vm3, %v481_v36 }
  0xf6   : > { %v564_v41 = vpop.permute.xlu0 %563 }
 0x105   : > { %v585_v48 = vpop.permute.xlu0 %584 }
 0x106   : > { %962 = vrcp.f32 %v585_v48 }
 0x15c   : > { %v356_v37 = vpop.f32.mrb[0].mxu1 }
 0x15d   : > { %v837_v38 = vpop.f32.mrb[1].mxu1 }
 0x15e   : > { %v359_v39 = vpop.f32.mrb[2].mxu1 }
 0x15f   : > { %v838_v40 = vpop.f32.mrb[3].mxu1 }
 0x16e   : > { %v549_v42 = vpop.f32.mrb[0].mxu0 }
 0x16f   : > { %v867_v43 = vadd.f32 %v549_v42, %v356_v37  ;;  %v865_v44 = vpop.f32.mrb[1].mxu0 }
 0x170   : > { %v552_v45 = vpop.f32.mrb[2].mxu0 }
 0x171   : > { %v558_v46 = vpack.c.bf16 %v867_v43, %v867_v43  ;;  %v566_v47 = vmul.f32 %v867_v43, %v564_v41  ;;  %v866_v49 = vpop.f32.mrb[3].mxu0 }
 0x173   : > { %v567_v50 = vrot.slane %v566_v47, 4  ;;  %559 = vst [vmem:[%s268_s11] sm:$0xf] %v558_v46 }
 0x174   : > { %1065 = shalt.err (!%p1062_p4)
}
 0x175   : > { %s1066_s30 = scalar_lea.hbm %s1439_s10, 64  ;;  %s1070_s27 = scalar_lea.hbm %s1516_s3, 320 }
 0x176   : > { %p1067_p10 = scmp.ne.s32.totalorder %s1439_s10, %s1066_s30  ;;  %p1071_p13 = scmp.lt.u32.totalorder %s1439_s10, %s1516_s3 }
 0x177   : > { %p1072_p12 = scmp.lt.u32.totalorder %s1070_s27, %s1066_s30  ;;  %p1074_p3 = scmp.lt.u32.totalorder %s1066_s30, %s1439_s10 }
 0x178   : > { %p1068_p8 = pnand %p1067_p10, %p1534_p11 }
 0x179   : > { %p1073_p6 = por %p1072_p12, %p1071_p13 }
 0x17a   : > { %p1069_p7 = pneg %p1068_p8 }
 0x17b   : > { %p1075_p2 = por %p1074_p3, %p1073_p6 }
 0x17d   : > { %p1076_p5 = pnand %p1075_p2, %p1069_p7 }
 0x17f   : > { %1079 = shalt.err (!%p1076_p5)
}
 0x180   : > { %880 = dma.vmem_to_hbm [thread:$0]  (%p1534_p11), %s1441_s13, 64, %s1439_s10, %s602_s6   ;;  %v568_v51 = vadd.f32 %v567_v50, %v566_v47  ;;  %v963_v56 = vpop.eup %962  ;;  %vm598_vm4 = vcmask 1040384  }
 0x181   : > { %s779_s11 = sshll.u32 %s1384_s12, 1  ;;  %s803_s13 = sshll.u32 %s1282_s28, 5 }
 0x182   : > { %v569_v52 = vrot.slane %v568_v51, 2  ;;  %s275_s26 = scalar_lea.vmem [#allocation10], %s779_s11  ;;  %s1470_s7 = scalar_lea.hbm %s1517_s4, %s803_s13 }
 0x183   : > { %s633_s20 = sshll.u32 %s275_s26, 4  ;;  %s607_s24 = scalar_lea.sflag [#allocation11], %s1384_s12  ;;  %s1472_s20 = int_to_ptr.vmem [resolvable:$true] %s633_s20 }
 0x184   : > { %v570_v53 = vadd.f32 %v569_v52, %v568_v51  ;;  %s1080_s14 = scalar_lea.vmem %s1472_s20, 32  ;;  %s1169_s28 = smov [#allocation10]  }
 0x185   : > { %p1081_p0 = scmp.ne.s32.totalorder %s1472_s20, %s1080_s14  ;;  %s1084_s21 = sshll.u32 %s1169_s28, 4  ;;  %s1085_s21 = int_to_ptr.vmem [resolvable:$false] %s1084_s21 }
 0x186   : > { %v571_v54 = vrot.slane %v570_v53, 1  ;;  %s1086_s30 = scalar_lea.vmem %s1085_s21, 64  ;;  %p1087_p4 = scmp.lt.s32.totalorder %s1472_s20, %s1085_s21 }
 0x187   : > { %p1082_p9 = pnand %p1081_p0, %p1534_p11  ;;  %p1088_p10 = scmp.lt.s32.totalorder %s1086_s30, %s1080_s14 }
 0x188   : > { %v572_v55 = vadd.f32 %v571_v54, %v570_v53 }
 0x189   : > { %p1083_p1 = pneg %p1082_p9  ;;  %p1089_p8 = por %p1088_p10, %p1087_p4 }
 0x18a   : > { %v588_v57 = vmul.f32 %v963_v56, %v572_v55 }
 0x18b   : > { %p1090_p7 = pnand %p1089_p8, %p1083_p1 }
 0x18c   : > { %v589_v58 = vsub.f32 %v867_v43, %v588_v57 }
 0x18e   : > { %v590_v59 = vmul.f32 %v589_v58, %v564_v41 }
 0x190   : > { %v591_v60 = vmul.f32 %v590_v59, %v590_v59 }
 0x192   : > { %v592_v61 = vrot.slane %v591_v60, 4 }
 0x194   : > { %v593_v62 = vadd.f32 %v592_v61, %v591_v60 }
 0x196   : > { %v594_v63 = vrot.slane %v593_v62, 2 }
 0x198   : > { %v595_v0 = vadd.f32 %v594_v63, %v593_v62 }
 0x19a   : > { %v596_v1 = vrot.slane %v595_v0, 1 }
 0x19c   : > { %v597_v2 = vadd.f32 %v596_v1, %v595_v0 }
 0x19e   : > { %v599_v3 = vsel %vm598_vm4, %v572_v55, %v597_v2 }
 0x19f   : > { %600 = vst [vmem:[%s275_s26] sm:$0x3] %v599_v3 }
 0x1a0   : > { %1093 = shalt.err (!%p1090_p7)
}
 0x1a1   : > { %s1094_s12 = scalar_lea.hbm %s1470_s7, 32  ;;  %s1098_s27 = scalar_lea.hbm %s1517_s4, 160 }
 0x1a2   : > { %p1095_p13 = scmp.ne.s32.totalorder %s1470_s7, %s1094_s12  ;;  %p1099_p3 = scmp.lt.u32.totalorder %s1470_s7, %s1517_s4 }
 0x1a3   : > { %p1100_p2 = scmp.lt.u32.totalorder %s1098_s27, %s1094_s12  ;;  %p1102_p0 = scmp.lt.u32.totalorder %s1094_s12, %s1470_s7 }
 0x1a4   : > { %p1096_p12 = pnand %p1095_p13, %p1534_p11 }
 0x1a5   : > { %p1101_p5 = por %p1100_p2, %p1099_p3 }
 0x1a6   : > { %p1097_p6 = pneg %p1096_p12 }
 0x1a7   : > { %p1103_p9 = por %p1102_p0, %p1101_p5 }
 0x1a9   : > { %p1104_p1 = pnand %p1103_p9, %p1097_p6 }
 0x1ab   : > { %1107 = shalt.err (!%p1104_p1)
}
 0x1ac   : > { %881 = dma.vmem_to_hbm [thread:$0]  (%p1534_p11), %s1472_s20, 32, %s1470_s7, %s607_s24  }
 0x1ad PF: > { %p905_p4 = scmp.ge.s32.totalorder %s1158_s18, 2  ;;  %s645_s11 = sand.u32 1, %s1146_s15  }
 0x1ae   : > { %p1535_p10 = scmp.ne.s32.totalorder %s1526_s5, 0  ;;  %s646_s13 = scalar_lea.sflag [#allocation5], %s645_s11 }
 0x1b0   : > { %p896_p8 = pnand %p905_p4, %p1535_p10 }
 0x1b2   : > { %1137 = dma.done.wait (!%p896_p8), %s646_s13, 64  }
 0x1b3   : > { %1139 = vsyncadd (!%p896_p8), %s646_s13, 4294967232  ;;  %s655_s26 = scalar_lea.sflag [#allocation11], %s645_s11 }
 0x1b4   : > { %1141 = dma.done.wait (!%p896_p8), %s655_s26, 32  }
 0x1b5   : > { %1143 = vsyncadd (!%p896_p8), %s655_s26, 4294967264  ;;  %p22_p11 = scmp.ge.s32.totalorder %s1216_s19, 7   ;;  %s1536_s15 = smov %s1150_s16 }
 0x1b6   : > { %s1537_s16 = smov %s1154_s17  ;;  %s1538_s17 = smov %s1225_s22 }
 0x1b7   : > { %s1539_s18 = smov %s1216_s19  ;;  %24 = sbr.rel (!%p22_p11) target bundleno = 8 (0x8), region = 111 }
 0x1be   :  { %660 = vsyncpa [#allocation4], 1 }
 0x1bf   :  { %662 = vsyncpa [#allocation4 + $0x1], 1 }
 0x1c0   :  { %663 = vsyncpa [#allocation7], 1 }
 0x1c1   :  { %664 = vsyncpa [#allocation5], 1 }
 0x1c2   :  { %666 = vsyncpa [#allocation5 + $0x1], 1 }
 0x1c3   :  { %667 = vsyncpa [#allocation11], 1 }
 0x1c4   :  { %669 = vsyncpa [#allocation11 + $0x1], 1 }

</bundles_post_ra>
